<compile_context>
chip_gen: v7x
topology: tpu7x:2x2x1
jax: 0.10.0
libtpu: 0.0.40
codegen_flags: <defaults>
</compile_context>

<pallas_src>
import jax
import jax.numpy as jnp
from jax.experimental import pallas as pl
from jax.experimental.pallas import tpu as pltpu


def _round_up(x, m):
    return (x + m - 1) // m * m


def _embed_onehot_kernel(ids_ref, table_ref, o_ref):
    # ids_ref   : (T, 1) int32 token ids for this tile (VMEM)
    # table_ref : (V, E) full embedding table, resident in VMEM across steps
    # o_ref     : (T, E) output tile
    ids = ids_ref[...]                                   # (T, 1)
    T = ids.shape[0]
    V = table_ref.shape[0]
    vocab_iota = jax.lax.broadcasted_iota(jnp.int32, (T, V), 1)
    onehot = (vocab_iota == ids).astype(table_ref.dtype)  # (T, V), exact 0/1
    # Gather on the MXU: each output row is exactly one table row.
    o_ref[...] = jnp.dot(
        onehot, table_ref[...], preferred_element_type=jnp.float32
    ).astype(o_ref.dtype)


def embed_sentence(sentence, table, *, token_tile=256):
    """Equivalent of nn.Embedding(vocab_size, embed_size)(sentence).

    sentence: (B, S) integer token ids
    table   : (V, E) embedding weights
    returns : (B, S, E) with table.dtype
    """
    B, S = sentence.shape
    V, E = table.shape

    flat = sentence.reshape(-1).astype(jnp.int32)         # (N,)
    N = flat.shape[0]

    # Token tile: multiple of 8 (sublane-dense stores); 256 feeds the MXU
    # fully on v6e/v7x and is 2x the v5e MXU edge (no padding waste).
    T = min(token_tile, _round_up(N, 8))
    N_pad = _round_up(N, T)
    ids = jnp.pad(flat, (0, N_pad - N))                    # pad with id 0
    ids2d = ids.reshape(N_pad, 1)
    grid = (N_pad // T,)

    # Resident-table VMEM budget (table + double-buffered ids/out tiles),
    # kept well under the v7x 64 MiB physical VMEM.
    table_bytes = V * E * jnp.dtype(table.dtype).itemsize
    tile_bytes = 2 * (T * E * 4 + T * 4)
    vmem_needed = table_bytes + tile_bytes + (2 << 20)
    assert vmem_needed < (48 << 20), (
        "embedding table too large for the resident-VMEM path; "
        "use the manual-DMA gather variant")  # TODO(synk): large-V path
    vmem_limit = max(int(1.25 * vmem_needed), 16 << 20)

    out_flat = pl.pallas_call(
        _embed_onehot_kernel,
        out_shape=jax.ShapeDtypeStruct((N_pad, E), table.dtype),
        grid_spec=pltpu.PrefetchScalarGridSpec(
            num_scalar_prefetch=0,
            grid=grid,
            in_specs=[
                # Per-step tile of token ids (last dim 1 == full array extent).
                pl.BlockSpec((T, 1), lambda i: (i, 0)),
                # Full table, same block every step -> DMA'd once, stays in VMEM.
                pl.BlockSpec((V, E), lambda i: (0, 0)),
            ],
            out_specs=pl.BlockSpec((T, E), lambda i: (i, 0)),
        ),
        compiler_params=pltpu.CompilerParams(
            dimension_semantics=("parallel",),   # independent token tiles
            vmem_limit_bytes=vmem_limit,
        ),
    )(ids2d, table)

    return out_flat[:N].reshape(B, S, E)


if __name__ == "__main__":
    # Deterministic synthetic parameters (nn.Embedding branch of EmbedSentence;
    # no gensim / word2vec / glove weight files are loaded).
    VOCAB_SIZE = 32
    EMBED_SIZE = 128   # lane-aligned embedding width
    BATCH = 2
    SEQ = 8

    key = jax.random.PRNGKey(0)
    k_w, k_idx = jax.random.split(key)

    # Embedding weight table, analogous to nn.Embedding(vocab, embed).weight
    embed_table = jax.random.normal(
        k_w, (VOCAB_SIZE, EMBED_SIZE), dtype=jnp.float32)

    # "sentence": integer token ids, shape (batch, seq_len)
    sentence = jax.random.randint(
        k_idx, (BATCH, SEQ), 0, VOCAB_SIZE, dtype=jnp.int32)

    out = embed_sentence(sentence, embed_table)
    out = jax.block_until_ready(out)

    # Reference: plain JAX gather (== torch nn.Embedding forward).
    ref = embed_table[sentence]
    assert out.shape == (BATCH, SEQ, EMBED_SIZE)
    assert out.dtype == jnp.float32
    assert bool(jnp.allclose(out, ref)), "Pallas embedding mismatch vs reference"

    print("KERNEL_OK")
</pallas_src>

<mosaic_0001>
module attributes {stable_mosaic.version = 11 : i64} {
  func.func @_embed_onehot_kernel(%arg0: i32, %arg1: memref<16x1xi32, #tpu.memory_space<vmem>>, %arg2: memref<32x128xf32, #tpu.memory_space<vmem>>, %arg3: memref<16x128xf32, #tpu.memory_space<vmem>>) attributes {dimension_semantics = [#tpu.dimension_semantics<parallel>], iteration_bounds = array<i64: 1>, scalar_prefetch = 0 : i64, scratch_operands = 0 : i64, tpu.core_type = #tpu.core_type<tc>, window_params = [{transform_indices = @transform_0, window_bounds = array<i64: 16, 1>}, {pipeline_mode = #tpu.pipeline_mode<synchronous>, transform_indices = @transform_1, window_bounds = array<i64: 32, 128>}, {transform_indices = @transform_2, window_bounds = array<i64: 16, 128>}]} {
    %c0 = arith.constant 0 : index
    %c0_0 = arith.constant 0 : index
    %0 = vector.load %arg1[%c0, %c0_0] : memref<16x1xi32, #tpu.memory_space<vmem>>, vector<16x1xi32>
    %1 = tpu.iota {dimensions = array<i32: 1>} : vector<16x32xi32>
    %2 = vector.broadcast %0 : vector<16x1xi32> to vector<16x32xi32>
    %3 = arith.cmpi eq, %1, %2 : vector<16x32xi32>
    %4 = arith.extui %3 : vector<16x32xi1> to vector<16x32xi32>
    %5 = arith.sitofp %4 : vector<16x32xi32> to vector<16x32xf32>
    %c0_1 = arith.constant 0 : index
    %c0_2 = arith.constant 0 : index
    %6 = vector.load %arg2[%c0_1, %c0_2] : memref<32x128xf32, #tpu.memory_space<vmem>>, vector<32x128xf32>
    %cst = arith.constant dense<0.000000e+00> : vector<16x128xf32>
    %7 = tpu.matmul %5, %6, %cst {dimension_numbers = #tpu.dot_dimension_numbers<[1], [0], [0], [1], [0, 0, 1, 1], [], []>} : vector<16x32xf32>, vector<32x128xf32>, vector<16x128xf32> -> vector<16x128xf32>
    %c0_3 = arith.constant 0 : index
    %c0_4 = arith.constant 0 : index
    %8 = vector.load %arg3[%c0_3, %c0_4] : memref<16x128xf32, #tpu.memory_space<vmem>>, vector<16x128xf32>
    tpu.vector_store %arg3[%c0_3, %c0_4], %7 {strides = array<i32>} : memref<16x128xf32, #tpu.memory_space<vmem>>, vector<16x128xf32>,
    return
  }
  func.func @transform_0(%arg0: i32) -> (i32, i32) {
    %c0_i32 = arith.constant 0 : i32
    %c0_i32_0 = arith.constant 0 : i32
    return %arg0, %c0_i32 : i32, i32
  }
  func.func @transform_1(%arg0: i32) -> (i32, i32) {
    %c0_i32 = arith.constant 0 : i32
    %c0_i32_0 = arith.constant 0 : i32
    %c0_i32_1 = arith.constant 0 : i32
    return %c0_i32, %c0_i32_0 : i32, i32
  }
  func.func @transform_2(%arg0: i32) -> (i32, i32) {
    %c0_i32 = arith.constant 0 : i32
    %c0_i32_0 = arith.constant 0 : i32
    return %arg0, %c0_i32 : i32, i32
  }
}

</mosaic_0001>

<bundles_post_ra>
// kernel: tpu_custom_call.1
= control target key start
LH: loop header
LB: loop body
LE: loop exit
PB: predicated region body
PF: predicated region fallthrough
CT: control target
= control target key end

     0   :  { %7 = vsyncpa [#allocation3], 0  ;;  %s288_s0 = inlined_call_operand.vmem [shape: s32[16,1], index: 0, kind: input, shape index: {}]   ;;  %s289_s1 = inlined_call_operand.hbm [shape: f32[32,128], index: 1, kind: input, shape index: {}]   ;;  %s290_s2 = inlined_call_operand.hbm [shape: f32[16,128], index: 2, kind: output, shape index: {}]  }
   0x1   :  { %8 = vsyncpa [#allocation4], 0  ;;  %s231_s9 = smov [#allocation2]   ;;  %s183_s13 = scalar_lea.hbm %s289_s1, 512 }
   0x2   :  { %s16_s10 = sshll.u32 %s231_s9, 4  ;;  %p184_p0 = scmp.ne.s32.totalorder %s289_s1, %s183_s13  ;;  %s17_s10 = int_to_ptr.vmem [resolvable:$true] %s16_s10 }
   0x3   :  { %p187_p1 = scmp.lt.u32.totalorder %s183_s13, %s289_s1 }
   0x5   :  { %p189_p2 = pnand %p187_p1, %p184_p0 }
   0x7   :  { %192 = shalt.err (!%p189_p2)
}
   0x8   :  { %s193_s18 = scalar_lea.vmem %s17_s10, 512  ;;  %p198_p4 = scmp.lt.s32.totalorder %s17_s10, %s17_s10 }
   0x9   :  { %p194_p3 = scmp.ne.s32.totalorder %s17_s10, %s193_s18  ;;  %p199_p5 = scmp.lt.s32.totalorder %s193_s18, %s193_s18 }
   0xb   :  { %p200_p6 = por %p199_p5, %p198_p4 }
   0xd   :  { %p201_p7 = pnand %p200_p6, %p194_p3 }
   0xf   :  { %204 = shalt.err (!%p201_p7)
}
  0x10   :  { %s232_s19 = smov 128   ;;  %s233_s20 = smov 8  }
  0x11   :  { %22 = dma.hbm_to_vmem [thread:$0]  %s289_s1, 512, %s17_s10, [#allocation3], %s232_s19, %s232_s19, %s233_s20  }
  0x12   :  { %227 = dma.done.wait [#allocation3], 512  }
  0x13   :  { %228 = vsyncadd [#allocation3], 4294966784  ;;  %v234_v0 = vmov 0   ;;  %v26_v1 = vld [vmem:[%s288_s0] sm:$0xff]  ;;  %v43_v3 = vld [vmem:[#allocation2 + $0x8] sm:$0xff]  ;;  %v28_v9 = vlaneseq  ;;  %vm46_vm0 = vcmask 261120  }
  0x14   :  { %182 = vset.pattern.permute.xlu0 %v234_v0  ;;  %v42_v2 = vld [vmem:[#allocation2] sm:$0xff]  ;;  %v44_v4 = vld [vmem:[#allocation2 + $0x10] sm:$0xff]  ;;  %v45_v5 = vld [vmem:[#allocation2 + $0x18] sm:$0xff]  ;;  %v235_v12 = vmov 0.0  }
  0x15   :  { %31 = vperm.xlu0 %182, %v26_v1   ;;  %v27_v6 = vld [vmem:[%s288_s0 + $0x8] sm:$0xff]  ;;  %v168_v7 = vpack.c.bf16 %v43_v3, %v42_v2  ;;  %v172_v8 = vpack.c.bf16 %v45_v5, %v44_v4  ;;  %v29_v10 = vand.u32 127, %v28_v9  ;;  %s236_s0 = smov [#allocation5]  }
  0x16   :  { %s135_s1 = sshll.u32 %s236_s0, 4  ;;  %s136_s1 = int_to_ptr.vmem [resolvable:$true] %s135_s1 }
  0x17   :  { %169 = vmatprep.subr.bf16.mxu0 %v168_v7  ;;  %s205_s27 = scalar_lea.vmem %s136_s1, 256  ;;  %p210_p9 = scmp.lt.s32.totalorder %s136_s1, %s136_s1 }
  0x18   :  { %171 = vmatpush3.bf16.msra.mxu0 %v168_v7  ;;  %p206_p8 = scmp.ne.s32.totalorder %s136_s1, %s205_s27  ;;  %p211_p10 = scmp.lt.s32.totalorder %s205_s27, %s205_s27 }
  0x19   :  { %34 = vperm.xlu0 %182, %v27_v6   ;;  %173 = vmatprep.subr.bf16.mxu0 %v172_v8 }
  0x1a   :  { %p212_p11 = por %p211_p10, %p210_p9 }
  0x1c   :  { %175 = vmatpush3.bf16.msra.mxu0 %v172_v8  ;;  %p213_p12 = pnand %p212_p11, %p206_p8 }
  0x94   :  { %v32_v11 = vpop.permute.xlu0 %31 }
  0x95   :  { %vm36_vm1 = vcmp.eq.s32.totalorder %v29_v10, %v32_v11 }
  0x96   :  { %v147_v13 = vsel %vm36_vm1, 1.0, %v235_v12 }
  0x97   :  { %165 = vmatprep.mubr.msk.f32.mxu0 %vm46_vm0, %v147_v13 }
  0x98   :  { %v35_v14 = vpop.permute.xlu0 %34 }
  0x99   :  { %vm37_vm2 = vcmp.eq.s32.totalorder %v29_v10, %v35_v14 }
  0x9a   :  { %v148_v15 = vsel %vm37_vm2, 1.0, %v235_v12 }
  0x9b   :  { %166 = vmatmul.mubr.msk.f32.vlgmr.msra.gmra.mrb[0].mxu0 %vm46_vm0, %v148_v15 }
 0x16e   :  { %v167_v16 = vpop.f32.mrb[0].mxu0 }
 0x16f   :  { %129 = vst [vmem:[#allocation5 + $0x8] sm:$0xff] %v167_v16  ;;  %v119_v17 = vpop.f32.mrb[1].mxu0 }
 0x170   :  { %128 = vst [vmem:[#allocation5] sm:$0xff] %v119_v17 }
 0x171   :  { %216 = shalt.err (!%p213_p12)
}
 0x172   :  { %s217_s30 = scalar_lea.hbm %s290_s2, 256 }
 0x173   :  { %p218_p13 = scmp.ne.s32.totalorder %s290_s2, %s217_s30  ;;  %p221_p0 = scmp.lt.u32.totalorder %s217_s30, %s290_s2 }
 0x175   :  { %p223_p1 = pnand %p221_p0, %p218_p13 }
 0x177   :  { %226 = shalt.err (!%p223_p1)
}
 0x178   :  { %141 = dma.vmem_to_hbm [thread:$0]  %s136_s1, 256, %s290_s2, [#allocation4], %s232_s19, %s232_s19, %s233_s20  }
 0x179   :  { %229 = dma.done.wait [#allocation4], 256  }
 0x17a   :  { %230 = vsyncadd [#allocation4], 4294967040 }
 0x17b   :  { %145 = vsyncpa [#allocation3], 1 }
 0x17c   :  { %146 = vsyncpa [#allocation4], 1 }

</bundles_post_ra>
